<compile_context>
chip_gen: v7x
topology: tpu7x:2x2x1
jax: 0.10.0
libtpu: 0.0.40
codegen_flags: <defaults>
</compile_context>

<pallas_src>
import jax
import jax.numpy as jnp
from jax.experimental import pallas as pl
from jax.experimental.pallas import tpu as pltpu

LN_EPS = 1e-12


def _bert_embeddings_kernel(x_ref, ids_ref, w_ref, tab_ref, ln_ref, o_ref):
    # ---- raw feature projection: bf16 MXU matmul, f32 accumulation ----
    e = jnp.dot(x_ref[...], w_ref[...], preferred_element_type=jnp.float32)  # (TM, H)
    e = e + ln_ref[0:1, :]                                                   # + bias

    # ---- fused embedding lookup: one f32 "three-hot" MXU matmul ----
    # ids_ref holds (TM, 3) ids already offset into the concatenated vocab.
    ids = ids_ref[...]
    tm = ids.shape[0]
    vtot = tab_ref.shape[0]
    col = jax.lax.broadcasted_iota(jnp.int32, (tm, vtot), 1)        # shared iota
    hot = ((col == ids[:, 0:1]) |
           (col == ids[:, 1:2]) |
           (col == ids[:, 2:3])).astype(jnp.float32)                # (TM, Vtot)
    # three-hot @ concat-table == E_wl[wl] + E_pos[pos] + E_hop[hop], exact in f32.
    e = e + jnp.dot(hot, tab_ref[...], preferred_element_type=jnp.float32)

    # ---- LayerNorm in f32 ----
    mean = jnp.mean(e, axis=-1, keepdims=True)
    var = jnp.mean(jnp.square(e - mean), axis=-1, keepdims=True)
    y = (e - mean) * jax.lax.rsqrt(var + LN_EPS)
    y = y * ln_ref[1:2, :] + ln_ref[2:3, :]                         # gamma, beta

    # dropout: identity (eval mode)
    o_ref[...] = y.astype(o_ref.dtype)


def _row_tile(n_rows, target):
    """Sublane-aligned row tile; keep >= 2 grid steps when possible (v7x megacore)."""
    tm = min(target, n_rows)
    if n_rows > 8:
        tm = min(tm, pl.cdiv(n_rows, 2))
    return max(8, ((tm + 7) // 8) * 8)


def _vmem_limit_bytes():
    """~75% of physical VMEM, capped at 96 MiB; safe 48 MiB fallback."""
    try:
        cap = pltpu.get_tpu_info().vmem_capacity_bytes
        return max(32 * 1024 * 1024, min((cap * 3) // 4, 96 * 1024 * 1024))
    except Exception:
        return 48 * 1024 * 1024


def bert_embeddings(raw_features, wl_role_ids, init_pos_ids, hop_dis_ids, params,
                    *, block_rows=1024, out_dtype=jnp.bfloat16):
    """raw_features: (B, S, X) float; *_ids: (B, S) int. Returns (B, S, H) out_dtype."""
    B, S, X = raw_features.shape
    H = params["w"].shape[1]
    n_wl = params["wl_tab"].shape[0]
    n_pos = params["pos_tab"].shape[0]
    N = B * S

    # Activations.
    x2d = raw_features.reshape(N, X).astype(jnp.bfloat16)
    # Single (N, 3) id array, offset into the concatenated vocabulary.
    ids3 = jnp.stack(
        [wl_role_ids.reshape(N).astype(jnp.int32),
         init_pos_ids.reshape(N).astype(jnp.int32) + n_wl,
         hop_dis_ids.reshape(N).astype(jnp.int32) + n_wl + n_pos],
        axis=-1)

    # Resident parameters: concatenated embedding table + packed LN params.
    emb_tab = jnp.concatenate(
        [params["wl_tab"], params["pos_tab"], params["hop_tab"]], axis=0)  # (Vtot, H) f32
    ln_params = jnp.stack(
        [params["b"], params["gamma"], params["beta"]], axis=0)            # (3, H)    f32

    TM = _row_tile(N, block_rows)
    grid = (pl.cdiv(N, TM),)

    def rows(width):
        return pl.BlockSpec((TM, width), lambda i: (i, 0))

    def resident(a):
        # Constant index_map -> block stays VMEM-resident across all grid steps.
        return pl.BlockSpec(a.shape, lambda i: (0, 0))

    out = pl.pallas_call(
        _bert_embeddings_kernel,
        out_shape=jax.ShapeDtypeStruct((N, H), out_dtype),
        grid=grid,
        in_specs=[
            rows(X),                 # raw feature tile      (TM, X)    bf16
            rows(3),                 # merged, offset ids    (TM, 3)    int32
            resident(params["w"]),   # linear.weight.T       (X, H)     bf16
            resident(emb_tab),       # concat embedding tab  (Vtot, H)  f32
            resident(ln_params),     # [bias; gamma; beta]   (3, H)     f32
        ],
        out_specs=rows(H),
        compiler_params=pltpu.CompilerParams(
            dimension_semantics=("parallel",),       # megacore sharding on v7x
            vmem_limit_bytes=_vmem_limit_bytes(),
        ),
    )(x2d, ids3, params["w"], emb_tab, ln_params)
    return out.reshape(B, S, H)


def _reference(raw_features, wl_role_ids, init_pos_ids, hop_dis_ids, params):
    B, S, X = raw_features.shape
    H = params["w"].shape[1]
    x = raw_features.reshape(-1, X).astype(jnp.bfloat16)
    e = jnp.dot(x, params["w"], preferred_element_type=jnp.float32) + params["b"][None, :]
    e = e + params["wl_tab"][wl_role_ids.reshape(-1)]
    e = e + params["pos_tab"][init_pos_ids.reshape(-1)]
    e = e + params["hop_tab"][hop_dis_ids.reshape(-1)]
    mean = e.mean(-1, keepdims=True)
    var = ((e - mean) ** 2).mean(-1, keepdims=True)
    y = (e - mean) / jnp.sqrt(var + LN_EPS) * params["gamma"] + params["beta"]
    return y.reshape(B, S, H)


def init_params(key, x_size, hidden_size, n_wl, n_pos, n_hop):
    ks = jax.random.split(key, 6)
    return {
        # raw_feature_embeddings: Linear(x_size, hidden) -- stored transposed (in, out), bf16
        "w": (0.02 * jax.random.normal(ks[0], (x_size, hidden_size))).astype(jnp.bfloat16),
        "b": (0.02 * jax.random.normal(ks[1], (hidden_size,))).astype(jnp.float32),
        # embedding tables, f32 (exact lookup semantics)
        "wl_tab": (0.02 * jax.random.normal(ks[2], (n_wl, hidden_size))).astype(jnp.float32),
        "pos_tab": (0.02 * jax.random.normal(ks[3], (n_pos, hidden_size))).astype(jnp.float32),
        "hop_tab": (0.02 * jax.random.normal(ks[4], (n_hop, hidden_size))).astype(jnp.float32),
        # LayerNorm(hidden)
        "gamma": (1.0 + 0.1 * jax.random.normal(ks[5], (hidden_size,))).astype(jnp.float32),
        "beta": jnp.zeros((hidden_size,), jnp.float32),
    }


if __name__ == "__main__":
    batch, seq = 2, 8
    x_size, hidden_size = 24, 32
    n_wl, n_pos, n_hop = 21, 16, 12   # max_wl_role_index+1, max_inti_pos_index, max_hop_dis_index

    key = jax.random.PRNGKey(0)
    kx, kwl, kpos, khop, kp = jax.random.split(key, 5)
    raw_features = jax.random.normal(kx, (batch, seq, x_size), jnp.float32)
    wl_role_ids = jax.random.randint(kwl, (batch, seq), 0, n_wl)
    init_pos_ids = jax.random.randint(kpos, (batch, seq), 0, n_pos)
    hop_dis_ids = jax.random.randint(khop, (batch, seq), 0, n_hop)
    params = init_params(kp, x_size, hidden_size, n_wl, n_pos, n_hop)

    out = bert_embeddings(raw_features, wl_role_ids, init_pos_ids, hop_dis_ids, params)
    out = jax.block_until_ready(out)

    ref = _reference(raw_features, wl_role_ids, init_pos_ids, hop_dis_ids, params)
    assert out.shape == (batch, seq, hidden_size)
    # bf16 output: allow bf16 rounding on O(1) LayerNormed values.
    assert jnp.allclose(out.astype(jnp.float32), ref, atol=2e-2, rtol=2e-2), \
        "mismatch vs JAX reference"

    print("KERNEL_OK")
</pallas_src>

<mosaic_0001>
module attributes {stable_mosaic.version = 11 : i64} {
  func.func @_bert_embeddings_kernel(%arg0: i32, %arg1: memref<8x24xbf16, #tpu.memory_space<vmem>>, %arg2: memref<8x3xi32, #tpu.memory_space<vmem>>, %arg3: memref<24x32xbf16, #tpu.memory_space<vmem>>, %arg4: memref<49x32xf32, #tpu.memory_space<vmem>>, %arg5: memref<3x32xf32, #tpu.memory_space<vmem>>, %arg6: memref<8x32xbf16, #tpu.memory_space<vmem>>) attributes {dimension_semantics = [#tpu.dimension_semantics<parallel>], iteration_bounds = array<i64: 2>, scalar_prefetch = 0 : i64, scratch_operands = 0 : i64, tpu.core_type = #tpu.core_type<tc>, window_params = [{transform_indices = @transform_0, window_bounds = array<i64: 8, 24>}, {transform_indices = @transform_1, window_bounds = array<i64: 8, 3>}, {pipeline_mode = #tpu.pipeline_mode<synchronous>, transform_indices = @transform_2, window_bounds = array<i64: 24, 32>}, {pipeline_mode = #tpu.pipeline_mode<synchronous>, transform_indices = @transform_3, window_bounds = array<i64: 49, 32>}, {pipeline_mode = #tpu.pipeline_mode<synchronous>, transform_indices = @transform_4, window_bounds = array<i64: 3, 32>}, {transform_indices = @transform_5, window_bounds = array<i64: 8, 32>}]} {
    %c0 = arith.constant 0 : index
    %c0_0 = arith.constant 0 : index
    %0 = vector.load %arg1[%c0, %c0_0] : memref<8x24xbf16, #tpu.memory_space<vmem>>, vector<8x24xbf16>
    %c0_1 = arith.constant 0 : index
    %c0_2 = arith.constant 0 : index
    %1 = vector.load %arg3[%c0_1, %c0_2] : memref<24x32xbf16, #tpu.memory_space<vmem>>, vector<24x32xbf16>
    %cst = arith.constant dense<0.000000e+00> : vector<8x32xf32>
    %2 = tpu.matmul %0, %1, %cst {dimension_numbers = #tpu.dot_dimension_numbers<[1], [0], [0], [1], [0, 0, 1, 1], [], []>} : vector<8x24xbf16>, vector<24x32xbf16>, vector<8x32xf32> -> vector<8x32xf32>
    %c0_3 = arith.constant 0 : index
    %c0_4 = arith.constant 0 : index
    %3 = vector.load %arg5[%c0_3, %c0_4] : memref<3x32xf32, #tpu.memory_space<vmem>>, vector<1x32xf32>
    %4 = vector.broadcast %3 : vector<1x32xf32> to vector<8x32xf32>
    %5 = arith.addf %2, %4 : vector<8x32xf32>
    %c0_5 = arith.constant 0 : index
    %c0_6 = arith.constant 0 : index
    %6 = vector.load %arg2[%c0_5, %c0_6] : memref<8x3xi32, #tpu.memory_space<vmem>>, vector<8x3xi32>
    %7 = tpu.iota {dimensions = array<i32: 1>} : vector<8x49xi32>
    %8 = vector.extract_strided_slice %6 {offsets = [0, 0], sizes = [8, 1], strides = [1, 1]} : vector<8x3xi32> to vector<8x1xi32>
    %9 = vector.broadcast %8 : vector<8x1xi32> to vector<8x49xi32>
    %10 = arith.cmpi eq, %7, %9 : vector<8x49xi32>
    %11 = vector.extract_strided_slice %6 {offsets = [0, 1], sizes = [8, 1], strides = [1, 1]} : vector<8x3xi32> to vector<8x1xi32>
    %12 = vector.broadcast %11 : vector<8x1xi32> to vector<8x49xi32>
    %13 = arith.cmpi eq, %7, %12 : vector<8x49xi32>
    %14 = arith.ori %10, %13 : vector<8x49xi1>
    %15 = vector.extract_strided_slice %6 {offsets = [0, 2], sizes = [8, 1], strides = [1, 1]} : vector<8x3xi32> to vector<8x1xi32>
    %16 = vector.broadcast %15 : vector<8x1xi32> to vector<8x49xi32>
    %17 = arith.cmpi eq, %7, %16 : vector<8x49xi32>
    %18 = arith.ori %14, %17 : vector<8x49xi1>
    %19 = arith.extui %18 : vector<8x49xi1> to vector<8x49xi32>
    %20 = arith.sitofp %19 : vector<8x49xi32> to vector<8x49xf32>
    %c0_7 = arith.constant 0 : index
    %c0_8 = arith.constant 0 : index
    %21 = vector.load %arg4[%c0_7, %c0_8] : memref<49x32xf32, #tpu.memory_space<vmem>>, vector<49x32xf32>
    %cst_9 = arith.constant dense<0.000000e+00> : vector<8x32xf32>
    %22 = tpu.matmul %20, %21, %cst_9 {dimension_numbers = #tpu.dot_dimension_numbers<[1], [0], [0], [1], [0, 0, 1, 1], [], []>} : vector<8x49xf32>, vector<49x32xf32>, vector<8x32xf32> -> vector<8x32xf32>
    %23 = arith.addf %5, %22 : vector<8x32xf32>
    %cst_10 = arith.constant dense<0.000000e+00> : vector<8xf32>
    %24 = vector.multi_reduction <add>, %23, %cst_10 [1] : vector<8x32xf32> to vector<8xf32>
    %25 = vector.shape_cast %24 : vector<8xf32> to vector<8x1xf32>
    %cst_11 = arith.constant 3.200000e+01 : f32
    %26 = vector.broadcast %cst_11 : f32 to vector<8x1xf32>
    %27 = arith.divf %25, %26 : vector<8x1xf32>
    %28 = vector.broadcast %27 : vector<8x1xf32> to vector<8x32xf32>
    %29 = arith.subf %23, %28 : vector<8x32xf32>
    %30 = arith.mulf %29, %29 : vector<8x32xf32>
    %cst_12 = arith.constant dense<0.000000e+00> : vector<8xf32>
    %31 = vector.multi_reduction <add>, %30, %cst_12 [1] : vector<8x32xf32> to vector<8xf32>
    %32 = vector.shape_cast %31 : vector<8xf32> to vector<8x1xf32>
    %cst_13 = arith.constant 3.200000e+01 : f32
    %33 = vector.broadcast %cst_13 : f32 to vector<8x1xf32>
    %34 = arith.divf %32, %33 : vector<8x1xf32>
    %35 = vector.broadcast %27 : vector<8x1xf32> to vector<8x32xf32>
    %36 = arith.subf %23, %35 : vector<8x32xf32>
    %cst_14 = arith.constant 9.99999996E-13 : f32
    %37 = vector.broadcast %cst_14 : f32 to vector<8x1xf32>
    %38 = arith.addf %34, %37 : vector<8x1xf32>
    %39 = math.rsqrt %38 : vector<8x1xf32>
    %40 = vector.broadcast %39 : vector<8x1xf32> to vector<8x32xf32>
    %41 = arith.mulf %36, %40 : vector<8x32xf32>
    %c1 = arith.constant 1 : index
    %c0_15 = arith.constant 0 : index
    %42 = vector.load %arg5[%c1, %c0_15] : memref<3x32xf32, #tpu.memory_space<vmem>>, vector<1x32xf32>
    %43 = vector.broadcast %42 : vector<1x32xf32> to vector<8x32xf32>
    %44 = arith.mulf %41, %43 : vector<8x32xf32>
    %c2 = arith.constant 2 : index
    %c0_16 = arith.constant 0 : index
    %45 = vector.load %arg5[%c2, %c0_16] : memref<3x32xf32, #tpu.memory_space<vmem>>, vector<1x32xf32>
    %46 = vector.broadcast %45 : vector<1x32xf32> to vector<8x32xf32>
    %47 = arith.addf %44, %46 : vector<8x32xf32>
    %48 = arith.truncf %47 : vector<8x32xf32> to vector<8x32xbf16>
    %c0_17 = arith.constant 0 : index
    %c0_18 = arith.constant 0 : index
    %49 = vector.load %arg6[%c0_17, %c0_18] : memref<8x32xbf16, #tpu.memory_space<vmem>>, vector<8x32xbf16>
    tpu.vector_store %arg6[%c0_17, %c0_18], %48 {strides = array<i32>} : memref<8x32xbf16, #tpu.memory_space<vmem>>, vector<8x32xbf16>,
    return
  }
  func.func @transform_0(%arg0: i32) -> (i32, i32) {
    %c0_i32 = arith.constant 0 : i32
    %c0_i32_0 = arith.constant 0 : i32
    return %arg0, %c0_i32 : i32, i32
  }
  func.func @transform_1(%arg0: i32) -> (i32, i32) {
    %c0_i32 = arith.constant 0 : i32
    %c0_i32_0 = arith.constant 0 : i32
    return %arg0, %c0_i32 : i32, i32
  }
  func.func @transform_2(%arg0: i32) -> (i32, i32) {
    %c0_i32 = arith.constant 0 : i32
    %c0_i32_0 = arith.constant 0 : i32
    %c0_i32_1 = arith.constant 0 : i32
    return %c0_i32, %c0_i32_0 : i32, i32
  }
  func.func @transform_3(%arg0: i32) -> (i32, i32) {
    %c0_i32 = arith.constant 0 : i32
    %c0_i32_0 = arith.constant 0 : i32
    %c0_i32_1 = arith.constant 0 : i32
    return %c0_i32, %c0_i32_0 : i32, i32
  }
  func.func @transform_4(%arg0: i32) -> (i32, i32) {
    %c0_i32 = arith.constant 0 : i32
    %c0_i32_0 = arith.constant 0 : i32
    %c0_i32_1 = arith.constant 0 : i32
    return %c0_i32, %c0_i32_0 : i32, i32
  }
  func.func @transform_5(%arg0: i32) -> (i32, i32) {
    %c0_i32 = arith.constant 0 : i32
    %c0_i32_0 = arith.constant 0 : i32
    return %arg0, %c0_i32 : i32, i32
  }
}

</mosaic_0001>

<bundles_post_ra>
// kernel: tpu_custom_call.1
= control target key start
LH: loop header
LB: loop body
LE: loop exit
PB: predicated region body
PF: predicated region fallthrough
CT: control target
= control target key end

     0   :  { %10 = vsyncpa [#allocation3], 0  ;;  %s886_s0 = inlined_call_operand.vmem [shape: bf16[16,24], index: 0, kind: input, shape index: {}]   ;;  %s887_s1 = inlined_call_operand.vmem [shape: s32[16,3], index: 1, kind: input, shape index: {}]   ;;  %s888_s2 = inlined_call_operand.vmem [shape: bf16[24,32], index: 2, kind: input, shape index: {}]   ;;  %s889_s3 = inlined_call_operand.vmem [shape: f32[49,32], index: 3, kind: input, shape index: {}]   ;;  %s890_s4 = inlined_call_operand.vmem [shape: f32[3,32], index: 4, kind: input, shape index: {}]   ;;  %s891_s5 = inlined_call_operand.hbm [shape: bf16[16,32], index: 5, kind: output, shape index: {}]  }
   0x1   :  { %12 = vsyncpa [#allocation3 + $0x1], 0  ;;  %s743_s18 = smov 0   ;;  %s745_s19 = smov 0  }
   0x2   :  { %s747_s20 = smov 0   ;;  %s749_s21 = smov 0  }
   0x3 LB: > { %s764_s22 = sadd.s32 4294967295, %s704_s21   ;;  %s524_s23 = sadd.s32 4294967294, %s704_s21   ;;  %s704_s21 = sphi %s749_s21, %s897_s21   ;;  %s700_s20 = sphi %s747_s20, %s896_s20   ;;  %s696_s19 = sphi %s745_s19, %s895_s19   ;;  %s692_s18 = sphi %s743_s18, %s894_s18  }
   0x4   : > { %s768_s24 = sadd.s32 1, %s704_s21   ;;  %s140_s25 = sadd.s32 1, %s700_s20 }
   0x5   : > { %s137_s26 = ssub.s32 %s704_s21, %s768_s24  ;;  %p150_p0 = scmp.ne.s32.totalorder %s700_s20, %s696_s19 }
   0x6   : > { %p138_p1 = scmp.eq.s32.totalorder %s137_s26, 0  ;;  %p151_p2 = scmp.eq.s32.totalorder %s764_s22, 1 }
   0x7   : > { %p156_p3 = scmp.ne.s32.totalorder %s696_s19, %s692_s18  ;;  %p157_p4 = scmp.eq.s32.totalorder %s524_s23, 1 }
   0x8   : > { %s779_s27 = scalar_select %p138_p1, %s700_s20, %s140_s25  }
   0x9   : > { %p781_p5 = por %p151_p2, %p150_p0  ;;  %p785_p6 = por %p157_p4, %p156_p3 }
   0xa   : > { %p527_p7 = scmp.ge.s32.totalorder %s704_s21, 1  ;;  %p198_p8 = scmp.lt.s32.totalorder %s704_s21, 3 }
   0xc   : > { %p199_p9 = pnand %p527_p7, %p198_p8 }
   0xd   : > { %p229_p10 = scmp.lt.s32.totalorder (!%p199_p9), %s764_s22, 1  ;;  %v323_v0 = vld [vmem:[%s889_s3] sm:$0xff] (!%p199_p9)  ;;  %v706_v1 = vmov (!%p199_p9), 0   ;;  %v707_v2 = vmov (!%p199_p9), 2   ;;  %v324_v3 = vld [vmem:[%s889_s3 + $0x8] sm:$0xff] (!%p199_p9)  ;;  %v708_v4 = vmov (!%p199_p9), 0.0|0.0   ;;  %v305_v20 = vlaneseq (!%p199_p9) }
   0xe   : > { %202 = sbr.rel (%p199_p9) target bundleno = 706 (0x2c2), region = 40  ;;  %634 = vset.pattern.permute.xlu0 (!%p199_p9), %v706_v1  ;;  %636 = vset.pattern.permute.xlu1 (!%p199_p9), %v707_v2  ;;  %v709_v5 = vmov (!%p199_p9), 0.0   ;;  %v581_v6 = vpack.c.bf16 (!%p199_p9), %v324_v3, %v323_v0  ;;  %v638_v7 = vld [vmem:[%s888_s2] sm:$0xff] (!%p199_p9)   ;;  %v325_v8 = vld [vmem:[%s889_s3 + $0x10] sm:$0xff] (!%p199_p9)  ;;  %v326_v9 = vld [vmem:[%s889_s3 + $0x18] sm:$0xff] (!%p199_p9)  ;;  %vm260_vm0 = vcmask (!%p199_p9), 1043456  }
   0xf   : > { %580 = vmatprep.subr.bf16.mxu1 (!%p199_p9), %v708_v4  ;;  %555 = vmatprep.subr.bf16.mxu0 (!%p199_p9), %v709_v5  ;;  %v584_v10 = vpack.c.bf16 (!%p199_p9), %v326_v9, %v325_v8  ;;  %v639_v11 = vld [vmem:[%s888_s2 + $0x8] ss:$0 sps:$4 sm:$0xff] (!%p199_p9)   ;;  %v327_v14 = vld [vmem:[%s889_s3 + $0x20] sm:$0xff] (!%p199_p9)  ;;  %vm710_vm1 = vmmov (!%p199_p9), 0   ;;  %vm256_vm2 = vcmask (!%p199_p9), 195584   ;;  %v711_v18 = vmov (!%p199_p9), 1  }
  0x10   : > { %582 = vmatpush3.bf16.msra.mxu1 (!%p199_p9), %v581_v6  ;;  %556 = vmatpush3.bf16.msra.mxu0 (!%p199_p9), %v638_v7  ;;  %v262_v13 = vsel (!%p199_p9), %vm260_vm0, %v639_v11, 0  ;;  %v328_v15 = vld [vmem:[%s889_s3 + $0x28] sm:$0xff] (!%p199_p9)  ;;  %v329_v19 = vld [vmem:[%s889_s3 + $0x30] sm:$0x1] (!%p199_p9)  ;;  %vm334_vm3 = vcmask (!%p199_p9), 1040384   ;;  %v306_v22 = vand.u32 (!%p199_p9), 127, %v305_v20 }
  0x11   : > { %583 = vmatprep.subr.bf16.mxu1 (!%p199_p9), %v708_v4  ;;  %557 = vmatprep.subr.bf16.mxu0 (!%p199_p9), %v709_v5  ;;  %v587_v16 = vpack.c.bf16 (!%p199_p9), %v328_v15, %v327_v14  ;;  %vm330_vm8 = vcmask (!%p199_p9), 400384   ;;  %v531_v30 = vld [vmem:[%s890_s4] ss:$0 sm:$0xff] (!%p199_p9)  ;;  %vm409_vm10 = vcmask (!%p199_p9), 261120   ;;  %s226_s23 = sand.u32 (!%p199_p9), 1, %s696_s19   ;;  %s541_s8 = sshll.u32 (!%p199_p9), %s764_s22, 6 }
  0x12   : > { %559 = vmatprep.mubr.msk.bf16.mxu0 (!%p199_p9), %vm710_vm1, %v709_v5  ;;  %577 = vmatprep.mubr.msk.f32.mxu1 (!%p199_p9), %vm710_vm1, %v709_v5  ;;  %v538_v45 = vld [vmem:[%s890_s4 + $0x1] ss:$0 sm:$0xff] (!%p199_p9)  ;;  %v539_v47 = vld [vmem:[%s890_s4 + $0x2] ss:$0 sm:$0xff] (!%p199_p9)  ;;  %vm437_vm11 = vcmask (!%p199_p9), 257024   ;;  %s440_s15 = scalar_lea.sflag (!%p199_p9), [#allocation3], %s226_s23 }
  0x14   : > { %585 = vmatpush3.bf16.msra.mxu1 (!%p199_p9), %v584_v10  ;;  %558 = vmatpush3.bf16.msra.mxu0 (!%p199_p9), %v262_v13 }
  0x15   : > { %s799_s9 = scalar_select %p229_p10, %s764_s22, 1  ;;  %586 = vmatprep.subr.bf16.mxu1 %v708_v4 }
  0x16   : > { %s712_s22 = smov [#allocation2]  }
  0x17   : > { %s530_s12 = sshll.u32 %s799_s9, 3  ;;  %s529_s11 = sshll.u32 %s799_s9, 2 }
  0x18   : > { %s236_s25 = scalar_lea.vmem %s887_s1, %s530_s12  ;;  %s232_s14 = scalar_lea.vmem %s886_s0, %s529_s11  ;;  %588 = vmatpush3.bf16.msra.mxu1 %v587_v16 }
  0x19   : > { %v304_v12 = vld [vmem:[%s236_s25] sm:$0xff]  ;;  %575 = vmatprep.subr.mxu1 %v709_v5  ;;  %s528_s25 = sshll.u32 %s226_s23, 2  ;;  %s646_s9 = sshll.u32 %s712_s22, 4  ;;  %s647_s9 = int_to_ptr.vmem [resolvable:$false] %s646_s9 }
  0x1a   : > { %308 = vperm.xlu0 %634, %v304_v12   ;;  %317 = vperm.xlu1 %636, %v304_v12   ;;  %v238_v17 = vld [vmem:[%s232_s14] sm:$0xf]  ;;  %s228_s10 = scalar_lea.vmem [#allocation2], %s528_s25  ;;  %s844_s14 = scalar_lea.hbm %s891_s5, %s541_s8 }
  0x1b   : > { %560 = vmatmul.mubr.msk.bf16.vlgmr.msra.gmra.mrb[0].mxu0 %vm256_vm2, %v238_v17  ;;  %s453_s11 = sshll.u32 %s228_s10, 4  ;;  %s648_s17 = scalar_lea.vmem %s647_s9, 128  ;;  %s846_s11 = int_to_ptr.vmem [resolvable:$true] %s453_s11 }
  0x1c   : > { %576 = vmatpush3.msk.msra.mxu1 %vm334_vm3, %v329_v19  ;;  %s642_s16 = scalar_lea.vmem %s846_s11, 64  ;;  %p649_p0 = scmp.lt.s32.totalorder %s846_s11, %s647_s9 }
  0x1d   : > { %p643_p11 = scmp.ne.s32.totalorder %s846_s11, %s642_s16  ;;  %p650_p1 = scmp.lt.s32.totalorder %s648_s17, %s642_s16 }
  0x1e   : > { %635 = vset.pattern.permute.xlu0 %v711_v18 }
  0x1f   : > { %312 = vperm.xlu0 %635, %v304_v12   ;;  %p644_p12 = pnand %p643_p11, %p781_p5  ;;  %p651_p2 = por %p650_p1, %p649_p0 }
  0x21   : > { %p645_p13 = pneg %p644_p12 }
  0x23   : > { %637 = vset.pattern.permute.xlu0 %v707_v2  ;;  %p652_p3 = pnand %p651_p2, %p645_p13 }
  0x99   : > { %v309_v21 = vpop.permute.xlu0 %308  ;;  %v318_v23 = vpop.permute.xlu1 %317 }
  0x9a   : > { %vm319_vm4 = vcmp.eq.s32.totalorder %v306_v22, %v318_v23  ;;  %vm310_vm5 = vcmp.eq.s32.totalorder %v306_v22, %v309_v21 }
  0x9e   : > { %v313_v24 = vpop.permute.xlu0 %312 }
  0x9f   : > { %vm314_vm6 = vcmp.eq.s32.totalorder %v306_v22, %v313_v24 }
  0xa0   : > { %vm315_vm7 = vmor %vm310_vm5, %vm314_vm6 }
  0xa1   : > { %vm320_vm9 = vmor %vm315_vm7, %vm319_vm4 }
  0xa2   : > { %v535_v25 = vsel %vm320_vm9, 1.0, %v709_v5 }
  0xa3   : > { %578 = vmatmul.mubr.msk.f32.vlgmr.msra.gmra.mrb[0].mxu1 %vm330_vm8, %v535_v25 }
  0xee   : > { %v298_v26 = vpop.f32.mrb[0].mxu0 }
  0xef   : > { %v561_v27 = vpop.f32.mrb[1].mxu0  ;;  %v299_v31 = vadd.f32 %v531_v30, %v298_v26 }
  0xf0   : > { %v301_v28 = vpop.f32.mrb[2].mxu0 }
  0xf1   : > { %v562_v29 = vpop.f32.mrb[3].mxu0 }
 0x176   : > { %v404_v32 = vpop.f32.mrb[0].mxu1 }
 0x177   : > { %v408_v33 = vadd.f32 %v404_v32, %v299_v31  ;;  %v579_v34 = vpop.f32.mrb[1].mxu1 }
 0x179   : > { %v410_v35 = vsel %vm409_vm10, %v408_v33, 0.0 }
 0x17a   : > { %411 = vadd.xlane.f32.xlu1 %v410_v35 }
 0x207   : > { %v412_v36 = vpop.xlane.xlu1 %411 }
 0x208   : > { %v414_v37 = vmul.f32 0.03125, %v412_v36 }
 0x20a   : > { %v415_v38 = vsub.f32 %v408_v33, %v414_v37 }
 0x20c   : > { %v416_v39 = vmul.f32 %v415_v38, %v415_v38 }
 0x20e   : > { %v417_v40 = vsel %vm409_vm10, %v416_v39, 0.0 }
 0x20f   : > { %418 = vadd.xlane.f32.xlu0 %v417_v40 }
 0x29c   : > { %v419_v41 = vpop.xlane.xlu0 %418 }
 0x29d   : > { %v420_v42 = vmul.f32 0.03125, %v419_v41 }
 0x29f   : > { %v421_v43 = vadd.f32 1e-12, %v420_v42 }
 0x2a1   : > { %640 = vrsqrt.f32 %v421_v43 }
 0x2ab   : > { %v641_v44 = vpop.eup %640 }
 0x2ac   : > { %v423_v46 = vmul.f32 %v641_v44, %v415_v38 }
 0x2ae   : > { %v429_v48 = vmul.f32 %v538_v45, %v423_v46 }
 0x2b0   : > { %v435_v49 = vadd.f32 %v539_v47, %v429_v48 }
 0x2b2   : > { %v436_v50 = vpack.c.bf16 %v435_v49, %v435_v49 }
 0x2b4   : > { %438 = vst.msk [vmem:[%s228_s10] sm:$0xf] %vm437_vm11, %v436_v50 }
 0x2b5   : > { %655 = shalt.err (!%p652_p3)
}
 0x2b6   : > { %s656_s23 = scalar_lea.hbm %s844_s14, 64  ;;  %s660_s30 = scalar_lea.hbm %s891_s5, 128 }
 0x2b7   : > { %p657_p4 = scmp.ne.s32.totalorder %s844_s14, %s656_s23  ;;  %p661_p9 = scmp.lt.u32.totalorder %s844_s14, %s891_s5 }
 0x2b8   : > { %p662_p10 = scmp.lt.u32.totalorder %s660_s30, %s656_s23  ;;  %p664_p12 = scmp.lt.u32.totalorder %s656_s23, %s844_s14 }
 0x2b9   : > { %p658_p7 = pnand %p657_p4, %p781_p5 }
 0x2ba   : > { %p663_p11 = por %p662_p10, %p661_p9 }
 0x2bb   : > { %p659_p8 = pneg %p658_p7 }
 0x2bc   : > { %p665_p13 = por %p664_p12, %p663_p11 }
 0x2be   : > { %p666_p0 = pnand %p665_p13, %p659_p8 }
 0x2c0   : > { %669 = shalt.err (!%p666_p0)
}
 0x2c1   : > { %589 = dma.vmem_to_hbm [thread:$0]  (%p781_p5), %s846_s11, 64, %s844_s14, %s440_s15  }
 0x2c2 PF: > { %p595_p1 = scmp.ge.s32.totalorder %s704_s21, 2  ;;  %s465_s8 = sand.u32 1, %s692_s18  }
 0x2c3   : > { %s466_s10 = scalar_lea.sflag [#allocation3], %s465_s8 }
 0x2c4   : > { %p592_p2 = pnand %p595_p1, %p785_p6 }
 0x2c6   : > { %687 = dma.done.wait (!%p592_p2), %s466_s10, 64  }
 0x2c7   : > { %689 = vsyncadd (!%p592_p2), %s466_s10, 4294967232  ;;  %p15_p3 = scmp.ge.s32.totalorder %s768_s24, 4   ;;  %s894_s18 = smov %s696_s19 }
 0x2c8   : > { %s895_s19 = smov %s700_s20  ;;  %s896_s20 = smov %s779_s27 }
 0x2c9   : > { %s897_s21 = smov %s768_s24  ;;  %17 = sbr.rel (!%p15_p3) target bundleno = 3 (0x3), region = 78 }
 0x2d0   :  { %471 = vsyncpa [#allocation3], 1 }
 0x2d1   :  { %473 = vsyncpa [#allocation3 + $0x1], 1 }

</bundles_post_ra>
